<compile_context>
chip_gen: v6e
topology: v6e:2x2x1
jax: 0.10.0
libtpu: 0.0.40
codegen_flags: <defaults>
</compile_context>

<pallas_src>
import functools
import math

import jax
import jax.numpy as jnp
from jax.experimental import pallas as pl
from jax.experimental.pallas import tpu as pltpu


def _round_up(x, m):
    return (x + m - 1) // m * m


@functools.lru_cache(maxsize=None)
def _vmem_limit_bytes():
    # Generation-aware budget: half of physical VMEM, capped at 64 MiB
    # (v5e/v6e: 64 MiB, v7x: 32 MiB).  Fallback is safe on every generation.
    try:
        return min(64 * 1024 * 1024,
                   int(pltpu.get_tpu_info().vmem_capacity_bytes) // 2)
    except Exception:
        return 32 * 1024 * 1024


def _compiler_params(semantics):
    return pltpu.CompilerParams(dimension_semantics=semantics,
                                vmem_limit_bytes=_vmem_limit_bytes())


def _row_tiles(rows, tm):
    """Row tile size (multiple of 8) and padded row count."""
    tm_eff = min(tm, _round_up(rows, 8))
    rpad = _round_up(rows, tm_eff)
    return tm_eff, rpad


def _gelu_tanh(x):
    # TODO(synk): PyTorch nn.GELU() default is erf-based; the tanh
    #             approximation is used here (EUP-friendly).
    c = math.sqrt(2.0 / math.pi)
    return 0.5 * x * (1.0 + jnp.tanh(c * (x + 0.044715 * x * x * x)))


# ---------------------------------------------------------------------------
# Kernel 1: plain linear, full weight resident.   out = act(x @ W + b)
# ---------------------------------------------------------------------------
def _linear_kernel(x_ref, w_ref, b_ref, o_ref, *, activation=None):
    y = jnp.dot(x_ref[...], w_ref[...], preferred_element_type=jnp.float32)
    y = y + b_ref[...].astype(jnp.float32)
    if activation == "gelu":
        y = _gelu_tanh(y)
    o_ref[...] = y.astype(o_ref.dtype)


def fused_linear(x2d, w, b, *, activation=None, tm=256):
    rows, K = x2d.shape
    Kw, N = w.shape
    assert Kw == K
    tm_eff, rpad = _row_tiles(rows, tm)
    xp = jnp.pad(x2d, ((0, rpad - rows), (0, 0))) if rpad != rows else x2d

    out = pl.pallas_call(
        functools.partial(_linear_kernel, activation=activation),
        out_shape=jax.ShapeDtypeStruct((rpad, N), x2d.dtype),
        grid_spec=pltpu.PrefetchScalarGridSpec(
            num_scalar_prefetch=0,
            grid=(rpad // tm_eff,),
            in_specs=[pl.BlockSpec((tm_eff, K), lambda i: (i, 0)),
                      pl.BlockSpec((K, N), lambda i: (0, 0)),     # resident W
                      pl.BlockSpec((1, N), lambda i: (0, 0))],    # resident b
            out_specs=pl.BlockSpec((tm_eff, N), lambda i: (i, 0)),
        ),
        compiler_params=_compiler_params(("parallel",)),
    )(xp, w, b.reshape(1, N))
    return out[:rows] if rpad != rows else out


# ---------------------------------------------------------------------------
# Kernel 2: per-batch multi-head softmax attention (stand-in for the RALA /
# FocusedLinearAttention core).  Reads the fused (S, 3D) QKV block, loops
# heads in-kernel, writes a lane-dense (S, D) block.
# ---------------------------------------------------------------------------
def _attn_kernel(qkv_ref, o_ref, *, n_heads, d_model, scale):
    dh = d_model // n_heads
    qkv = qkv_ref[0].astype(jnp.float32)                      # (S, 3D)
    outs = []
    for h in range(n_heads):                                  # static loop
        q = qkv[:, h * dh:(h + 1) * dh] * scale               # (S, dh)
        k = qkv[:, d_model + h * dh: d_model + (h + 1) * dh]
        v = qkv[:, 2 * d_model + h * dh: 2 * d_model + (h + 1) * dh]
        s = jax.lax.dot_general(q, k, (((1,), (1,)), ((), ())),
                                preferred_element_type=jnp.float32)  # (S, S)
        s = s - jnp.max(s, axis=-1, keepdims=True)
        p = jnp.exp(s)
        # NOTE: pl.reciprocal(..., approx=True) is a further EUP win but the
        # exact divide keeps the numerics tight for the reference check.
        p = p / jnp.sum(p, axis=-1, keepdims=True)
        outs.append(jnp.dot(p, v, preferred_element_type=jnp.float32))
    o = jnp.concatenate(outs, axis=-1)                         # (S, D)
    o_ref[...] = o[None].astype(o_ref.dtype)


def multi_head_attention(qkv3d, *, n_heads, d_model):
    B, S, threeD = qkv3d.shape
    assert threeD == 3 * d_model
    scale = 1.0 / math.sqrt(d_model // n_heads)
    return pl.pallas_call(
        functools.partial(_attn_kernel, n_heads=n_heads,
                          d_model=d_model, scale=scale),
        out_shape=jax.ShapeDtypeStruct((B, S, d_model), qkv3d.dtype),
        grid_spec=pltpu.PrefetchScalarGridSpec(
            num_scalar_prefetch=0,
            grid=(B,),
            in_specs=[pl.BlockSpec((1, S, threeD), lambda b: (b, 0, 0))],
            out_specs=pl.BlockSpec((1, S, d_model), lambda b: (b, 0, 0)),
        ),
        compiler_params=_compiler_params(("parallel",)),
    )(qkv3d)


# ---------------------------------------------------------------------------
# Kernel 3/5: linear + residual, with fused BatchNorm statistics.
#   h = x @ W + b + res ;  sum/sumsq accumulated over row tiles (masked tail).
# ---------------------------------------------------------------------------
def _linear_res_stats_kernel(x_ref, w_ref, b_ref, res_ref,
                             h_ref, sum_ref, sq_ref, *, rows, tm):
    i = pl.program_id(0)
    y = jnp.dot(x_ref[...], w_ref[...], preferred_element_type=jnp.float32)
    y = y + b_ref[...].astype(jnp.float32) + res_ref[...].astype(jnp.float32)
    h_ref[...] = y.astype(h_ref.dtype)

    @pl.when(i == 0)
    def _():
        sum_ref[...] = jnp.zeros_like(sum_ref)
        sq_ref[...] = jnp.zeros_like(sq_ref)

    row_idx = i * tm + jax.lax.broadcasted_iota(jnp.int32, y.shape, 0)
    ym = jnp.where(row_idx < rows, y, 0.0)       # mask padded rows
    sum_ref[...] += jnp.sum(ym, axis=0, keepdims=True)
    sq_ref[...] += jnp.sum(ym * ym, axis=0, keepdims=True)


def linear_residual_stats(x2d, w, b, res, *, tm=256):
    rows, K = x2d.shape
    _, N = w.shape
    tm_eff, rpad = _row_tiles(rows, tm)
    if rpad != rows:
        x2d = jnp.pad(x2d, ((0, rpad - rows), (0, 0)))
        res = jnp.pad(res, ((0, rpad - rows), (0, 0)))

    h, s, q = pl.pallas_call(
        functools.partial(_linear_res_stats_kernel, rows=rows, tm=tm_eff),
        out_shape=(jax.ShapeDtypeStruct((rpad, N), x2d.dtype),
                   jax.ShapeDtypeStruct((1, N), jnp.float32),
                   jax.ShapeDtypeStruct((1, N), jnp.float32)),
        grid_spec=pltpu.PrefetchScalarGridSpec(
            num_scalar_prefetch=0,
            grid=(rpad // tm_eff,),
            in_specs=[pl.BlockSpec((tm_eff, K), lambda i: (i, 0)),
                      pl.BlockSpec((K, N), lambda i: (0, 0)),
                      pl.BlockSpec((1, N), lambda i: (0, 0)),
                      pl.BlockSpec((tm_eff, N), lambda i: (i, 0))],
            out_specs=(pl.BlockSpec((tm_eff, N), lambda i: (i, 0)),
                       pl.BlockSpec((1, N), lambda i: (0, 0)),
                       pl.BlockSpec((1, N), lambda i: (0, 0))),
        ),
        # Stats accumulators are revisited every step -> sequential axis.
        compiler_params=_compiler_params(("arbitrary",)),
    )(x2d, w, b.reshape(1, N), res)
    return (h[:rows] if rpad != rows else h), s, q


# ---------------------------------------------------------------------------
# Kernel 4: BN1 affine apply fused with FF1 + GELU.
#   hn = h * scale + shift ;  ff = gelu(hn @ W1 + b1)   (hn also emitted,
#   it is the residual input of the feed-forward SkipConnection)
# ---------------------------------------------------------------------------
def _bn_ff1_kernel(h_ref, scale_ref, shift_ref, w_ref, b_ref, hn_ref, ff_ref):
    hn = h_ref[...].astype(jnp.float32) * scale_ref[...] + shift_ref[...]
    hn_ref[...] = hn.astype(hn_ref.dtype)
    ff = jnp.dot(hn, w_ref[...], preferred_element_type=jnp.float32)
    ff = _gelu_tanh(ff + b_ref[...].astype(jnp.float32))
    ff_ref[...] = ff.astype(ff_ref.dtype)


def bn_apply_ff1(h, scale, shift, w, b, *, tm=256):
    rows, D = h.shape
    _, FF = w.shape
    tm_eff, rpad = _row_tiles(rows, tm)
    hp = jnp.pad(h, ((0, rpad - rows), (0, 0))) if rpad != rows else h

    hn, ff = pl.pallas_call(
        _bn_ff1_kernel,
        out_shape=(jax.ShapeDtypeStruct((rpad, D), h.dtype),
                   jax.ShapeDtypeStruct((rpad, FF), h.dtype)),
        grid_spec=pltpu.PrefetchScalarGridSpec(
            num_scalar_prefetch=0,
            grid=(rpad // tm_eff,),
            in_specs=[pl.BlockSpec((tm_eff, D), lambda i: (i, 0)),
                      pl.BlockSpec((1, D), lambda i: (0, 0)),
                      pl.BlockSpec((1, D), lambda i: (0, 0)),
                      pl.BlockSpec((D, FF), lambda i: (0, 0)),
                      pl.BlockSpec((1, FF), lambda i: (0, 0))],
            out_specs=(pl.BlockSpec((tm_eff, D), lambda i: (i, 0)),
                       pl.BlockSpec((tm_eff, FF), lambda i: (i, 0))),
        ),
        compiler_params=_compiler_params(("parallel",)),
    )(hp, scale, shift, w, b.reshape(1, FF))
    if rpad != rows:
        hn, ff = hn[:rows], ff[:rows]
    return hn, ff


# ---------------------------------------------------------------------------
# Kernel 6: final BatchNorm affine apply.
# ---------------------------------------------------------------------------
def _bn_apply_kernel(x_ref, scale_ref, shift_ref, o_ref):
    x = x_ref[...].astype(jnp.float32)
    o_ref[...] = (x * scale_ref[...] + shift_ref[...]).astype(o_ref.dtype)


def bn_apply(x2d, scale, shift, *, tm=256):
    rows, D = x2d.shape
    tm_eff, rpad = _row_tiles(rows, tm)
    xp = jnp.pad(x2d, ((0, rpad - rows), (0, 0))) if rpad != rows else x2d
    out = pl.pallas_call(
        _bn_apply_kernel,
        out_shape=jax.ShapeDtypeStruct((rpad, D), x2d.dtype),
        grid_spec=pltpu.PrefetchScalarGridSpec(
            num_scalar_prefetch=0,
            grid=(rpad // tm_eff,),
            in_specs=[pl.BlockSpec((tm_eff, D), lambda i: (i, 0)),
                      pl.BlockSpec((1, D), lambda i: (0, 0)),
                      pl.BlockSpec((1, D), lambda i: (0, 0))],
            out_specs=pl.BlockSpec((tm_eff, D), lambda i: (i, 0)),
        ),
        compiler_params=_compiler_params(("parallel",)),
    )(xp, scale, shift)
    return out[:rows] if rpad != rows else out


def _bn_affine(s, q, rows, gamma, beta, eps=1e-5):
    """Fold training-mode BatchNorm1d into a per-feature scale / shift."""
    mean = s / rows                                    # (1, D)
    # One-pass E[x^2]-mean^2 (clamped); a two-pass/Welford form would need an
    # extra HBM pass over the activation.  Biased var matches PyTorch BN.
    var = jnp.maximum(q / rows - mean * mean, 0.0)
    inv = jax.lax.rsqrt(var + eps)
    scale = gamma.astype(jnp.float32).reshape(1, -1) * inv
    shift = beta.astype(jnp.float32).reshape(1, -1) - mean * scale
    # TODO(synk): running_mean / running_var buffer updates (nn.BatchNorm1d
    #             training-side state) are not part of the pure forward.
    return scale, shift


# ---------------------------------------------------------------------------
# Full MultiHeadAttentionLayer forward (6 fused pallas_calls, no XLA
# transposes, no pads at these shapes).
# ---------------------------------------------------------------------------
def multi_head_attention_layer(x, params, *, n_heads):
    B, S, D = x.shape
    assert D % n_heads == 0
    rows = B * S
    x2d = x.reshape(rows, D)

    # --- attention block (stand-in for RALA / FocusedLinearAttention) ---
    qkv = fused_linear(x2d, params["w_qkv"], params["b_qkv"])       # (rows,3D)
    attn = multi_head_attention(qkv.reshape(B, S, 3 * D),
                                n_heads=n_heads, d_model=D)         # (B,S,D)

    # output projection + residual + BN1 statistics, fused
    h, s1, q1 = linear_residual_stats(attn.reshape(rows, D),
                                      params["w_o"], params["b_o"], x2d)
    scale1, shift1 = _bn_affine(s1, q1, rows, params["gamma1"], params["beta1"])

    # BN1 apply fused with FF1+GELU; FF2 + skip + BN2 statistics, fused
    hn, ff = bn_apply_ff1(h, scale1, shift1, params["w_ff1"], params["b_ff1"])
    h2, s2, q2 = linear_residual_stats(ff, params["w_ff2"], params["b_ff2"], hn)
    scale2, shift2 = _bn_affine(s2, q2, rows, params["gamma2"], params["beta2"])

    out = bn_apply(h2, scale2, shift2)

    # TODO(synk): FocusedLinearAttention auxiliary loss / adj_mat graph bias
    #             are unspecified; loss is returned as 0.
    loss = jnp.zeros((), jnp.float32)
    return out.reshape(B, S, D), loss


# ---------------------------------------------------------------------------
# Plain-JAX reference (same math) and demo.
# ---------------------------------------------------------------------------
def _bn_ref(x2d, gamma, beta, eps=1e-5):
    mean = x2d.mean(axis=0)
    var = x2d.var(axis=0)
    return (x2d - mean) / jnp.sqrt(var + eps) * gamma + beta


def _reference(x, params, n_heads):
    B, S, D = x.shape
    dh = D // n_heads
    with jax.default_matmul_precision("highest"):
        x2d = x.reshape(-1, D)
        qkv = x2d @ params["w_qkv"] + params["b_qkv"]
        q, k, v = jnp.split(qkv, 3, axis=-1)

        def heads(t):
            return t.reshape(B, S, n_heads, dh).transpose(0, 2, 1, 3)

        qh, kh, vh = heads(q), heads(k), heads(v)
        s = jnp.einsum("bhqd,bhkd->bhqk", qh, kh) / math.sqrt(dh)
        p = jax.nn.softmax(s, axis=-1)
        o = jnp.einsum("bhqk,bhkd->bhqd", p, vh)
        o = o.transpose(0, 2, 1, 3).reshape(-1, D)
        h = x2d + (o @ params["w_o"] + params["b_o"])
        h = _bn_ref(h, params["gamma1"], params["beta1"])
        ff = _gelu_tanh(h @ params["w_ff1"] + params["b_ff1"])
        h = h + (ff @ params["w_ff2"] + params["b_ff2"])
        h = _bn_ref(h, params["gamma2"], params["beta2"])
    return h.reshape(B, S, D)


if __name__ == "__main__":
    key = jax.random.PRNGKey(0)
    keys = jax.random.split(key, 12)

    # batch=2, seq=8, embed_dim=128 (lane-dense), n_heads=4, ff_hidden=512
    B, S, D, H, FF = 2, 8, 128, 4, 512
    x = jax.random.normal(keys[0], (B, S, D), dtype=jnp.float32)

    def lin_w(kk, n_in, n_out, scl=0.05):
        # stored in (in, out) "x @ W" layout (== torch weight.T)
        return jax.random.normal(kk, (n_in, n_out), dtype=jnp.float32) * scl

    params = {
        "w_qkv": lin_w(keys[1], D, 3 * D),
        "b_qkv": jax.random.normal(keys[2], (3 * D,), jnp.float32) * 0.05,
        "w_o": lin_w(keys[3], D, D),
        "b_o": jax.random.normal(keys[4], (D,), jnp.float32) * 0.05,
        "gamma1": 1.0 + 0.1 * jax.random.normal(keys[5], (D,), jnp.float32),
        "beta1": 0.1 * jax.random.normal(keys[6], (D,), jnp.float32),
        "w_ff1": lin_w(keys[7], D, FF),
        "b_ff1": jax.random.normal(keys[8], (FF,), jnp.float32) * 0.05,
        "w_ff2": lin_w(keys[9], FF, D),
        "b_ff2": jax.random.normal(keys[10], (D,), jnp.float32) * 0.05,
        "gamma2": 1.0 + 0.1 * jax.random.normal(keys[11], (D,), jnp.float32),
        "beta2": jnp.zeros((D,), jnp.float32),
    }

    out, loss = multi_head_attention_layer(x, params, n_heads=H)
    out = jax.block_until_ready(out)

    ref = _reference(x, params, H)
    assert out.shape == (B, S, D)
    assert loss.shape == ()
    assert bool(jnp.isfinite(out).all())
    max_err = float(jnp.max(jnp.abs(out - ref)))
    # Tolerance covers MXU vs XLA matmul rounding-mode differences.
    assert jnp.allclose(out, ref, atol=2e-2, rtol=2e-2), max_err

    print("KERNEL_OK")
</pallas_src>

<mosaic_0001>
module attributes {stable_mosaic.version = 11 : i64} {
  func.func @_linear_kernel(%arg0: i32, %arg1: memref<16x128xf32, #tpu.memory_space<vmem>>, %arg2: memref<128x384xf32, #tpu.memory_space<vmem>>, %arg3: memref<1x384xf32, #tpu.memory_space<vmem>>, %arg4: memref<16x384xf32, #tpu.memory_space<vmem>>) attributes {dimension_semantics = [#tpu.dimension_semantics<parallel>], iteration_bounds = array<i64: 1>, scalar_prefetch = 0 : i64, scratch_operands = 0 : i64, tpu.core_type = #tpu.core_type<tc>, window_params = [{transform_indices = @transform_0, window_bounds = array<i64: 16, 128>}, {pipeline_mode = #tpu.pipeline_mode<synchronous>, transform_indices = @transform_1, window_bounds = array<i64: 128, 384>}, {pipeline_mode = #tpu.pipeline_mode<synchronous>, transform_indices = @transform_2, window_bounds = array<i64: 1, 384>}, {transform_indices = @transform_3, window_bounds = array<i64: 16, 384>}]} {
    %c0 = arith.constant 0 : index
    %c0_0 = arith.constant 0 : index
    %0 = vector.load %arg1[%c0, %c0_0] : memref<16x128xf32, #tpu.memory_space<vmem>>, vector<16x128xf32>
    %c0_1 = arith.constant 0 : index
    %c0_2 = arith.constant 0 : index
    %1 = vector.load %arg2[%c0_1, %c0_2] : memref<128x384xf32, #tpu.memory_space<vmem>>, vector<128x384xf32>
    %cst = arith.constant dense<0.000000e+00> : vector<16x384xf32>
    %2 = tpu.matmul %0, %1, %cst {dimension_numbers = #tpu.dot_dimension_numbers<[1], [0], [0], [1], [0, 0, 1, 1], [], []>} : vector<16x128xf32>, vector<128x384xf32>, vector<16x384xf32> -> vector<16x384xf32>
    %c0_3 = arith.constant 0 : index
    %c0_4 = arith.constant 0 : index
    %3 = vector.load %arg3[%c0_3, %c0_4] : memref<1x384xf32, #tpu.memory_space<vmem>>, vector<1x384xf32>
    %4 = vector.broadcast %3 : vector<1x384xf32> to vector<16x384xf32>
    %5 = arith.addf %2, %4 : vector<16x384xf32>
    %c0_5 = arith.constant 0 : index
    %c0_6 = arith.constant 0 : index
    %6 = vector.load %arg4[%c0_5, %c0_6] : memref<16x384xf32, #tpu.memory_space<vmem>>, vector<16x384xf32>
    tpu.vector_store %arg4[%c0_5, %c0_6], %5 {strides = array<i32>} : memref<16x384xf32, #tpu.memory_space<vmem>>, vector<16x384xf32>,
    return
  }
  func.func @transform_0(%arg0: i32) -> (i32, i32) {
    %c0_i32 = arith.constant 0 : i32
    %c0_i32_0 = arith.constant 0 : i32
    return %arg0, %c0_i32 : i32, i32
  }
  func.func @transform_1(%arg0: i32) -> (i32, i32) {
    %c0_i32 = arith.constant 0 : i32
    %c0_i32_0 = arith.constant 0 : i32
    %c0_i32_1 = arith.constant 0 : i32
    return %c0_i32, %c0_i32_0 : i32, i32
  }
  func.func @transform_2(%arg0: i32) -> (i32, i32) {
    %c0_i32 = arith.constant 0 : i32
    %c0_i32_0 = arith.constant 0 : i32
    %c0_i32_1 = arith.constant 0 : i32
    return %c0_i32, %c0_i32_0 : i32, i32
  }
  func.func @transform_3(%arg0: i32) -> (i32, i32) {
    %c0_i32 = arith.constant 0 : i32
    %c0_i32_0 = arith.constant 0 : i32
    return %arg0, %c0_i32 : i32, i32
  }
}

</mosaic_0001>

<bundles_post_ra>
// kernel: tpu_custom_call.1
= control target key start
LH: loop header
LB: loop body
LE: loop exit
PB: predicated region body
PF: predicated region fallthrough
CT: control target
= control target key end

     0   :  { %8 = vsyncpa [#allocation3], 0  ;;  %s461_s0 = inlined_call_operand.hbm [shape: f32[16,128], index: 0, kind: input, shape index: {}]   ;;  %s462_s1 = inlined_call_operand.hbm [shape: f32[128,384], index: 1, kind: input, shape index: {}]   ;;  %s463_s2 = inlined_call_operand.vmem [shape: f32[1,384], index: 2, kind: input, shape index: {}]   ;;  %s464_s3 = inlined_call_operand.hbm [shape: f32[16,384], index: 3, kind: output, shape index: {}]  }
   0x1   :  { %9 = vsyncpa [#allocation6], 0 }
   0x2   :  { %10 = vsyncpa [#allocation4], 0  ;;  %s413_s12 = smov [#allocation2]  }
   0x3   :  { %s16_s13 = sshll.u32 %s413_s12, 4  ;;  %s17_s13 = int_to_ptr.vmem [resolvable:$true] %s16_s13 }
   0x4   :  { %s355_s14 = scalar_lea.vmem %s17_s13, 256  ;;  %p360_p1 = scmp.lt.s32.totalorder %s17_s13, %s17_s13 }
   0x5   :  { %p356_p0 = scmp.ne.s32.totalorder %s17_s13, %s355_s14  ;;  %p361_p2 = scmp.lt.s32.totalorder %s355_s14, %s355_s14 }
   0x7   :  { %p362_p3 = por %p361_p2, %p360_p1 }
   0x9   :  { %p363_p4 = pnand %p362_p3, %p356_p0 }
   0xb   :  { %366 = shalt.err (!%p363_p4)
}
   0xc   :  { %s414_s15 = smov 128   ;;  %s415_s16 = smov 8  }
   0xd   :  { %22 = dma.hbm_to_vmem [thread:$0]  %s461_s0, 256, %s17_s13, [#allocation3], %s414_s15, %s414_s15, %s415_s16  }
   0xe   :  { %s416_s19 = smov [#allocation5]  }
   0xf   :  { %s28_s20 = sshll.u32 %s416_s19, 4  ;;  %s29_s20 = int_to_ptr.vmem [resolvable:$true] %s28_s20 }
  0x10   :  { %s375_s21 = scalar_lea.vmem %s29_s20, 6144  ;;  %p380_p6 = scmp.lt.s32.totalorder %s29_s20, %s29_s20 }
  0x11   :  { %p376_p5 = scmp.ne.s32.totalorder %s29_s20, %s375_s21  ;;  %p381_p7 = scmp.lt.s32.totalorder %s375_s21, %s375_s21 }
  0x13   :  { %p382_p8 = por %p381_p7, %p380_p6 }
  0x15   :  { %p383_p9 = pnand %p382_p8, %p376_p5 }
  0x17   :  { %386 = shalt.err (!%p383_p9)
}
  0x18   :  { %s417_s22 = smov 384   ;;  %s418_s23 = smov 24  }
  0x19   :  { %34 = dma.hbm_to_vmem [thread:$0]  %s462_s1, 6144, %s29_s20, [#allocation6], %s417_s22, %s417_s22, %s418_s23  }
  0x1a   :  { %407 = dma.done.wait [#allocation3], 256  }
  0x1b   :  { %408 = vsyncadd [#allocation3], 4294967040 }
  0x1c   :  { %409 = dma.done.wait [#allocation6], 6144  }
  0x1d   :  { %410 = vsyncadd [#allocation6], 4294961152  ;;  %v419_v0 = vmov 0.0   ;;  %v91_v1 = vld [vmem:[#allocation5 + $0x170] sm:$0xff]  ;;  %v90_v2 = vld [vmem:[#allocation5 + $0x168] sm:$0xff]  ;;  %v95_v51 = vlaneseq  ;;  %s420_s26 = smov [#allocation7]  }
  0x1e   :  { %174 = vmatprep.mubr.f32.mxu0 %v419_v0  ;;  %v88_v3 = vld [vmem:[#allocation5 + $0x158] sm:$0xff]  ;;  %110 = vmatprep.subr.mxu0 %v91_v1  ;;  %v87_v5 = vld [vmem:[#allocation5 + $0x150] sm:$0xff]  ;;  %v85_v6 = vld [vmem:[#allocation5 + $0x140] sm:$0xff]  ;;  %s273_s27 = sshll.u32 %s420_s26, 4  ;;  %s274_s27 = int_to_ptr.vmem [resolvable:$true] %s273_s27 }
  0x1f   :  { %v92_v4 = vld [vmem:[#allocation5 + $0x178] sm:$0xff]  ;;  %111 = vmatpush1.msra.mxu0 %v90_v2  ;;  %v89_v7 = vld [vmem:[#allocation5 + $0x160] sm:$0xff]  ;;  %v86_v9 = vld [vmem:[#allocation5 + $0x148] sm:$0xff]  ;;  %v96_v52 = vshrl.u32 %v95_v51, 7  ;;  %p392_p11 = scmp.lt.s32.totalorder %s274_s27, %s274_s27 }
  0x20   :  { %304 = vmatprep.subr.mxu1 %v92_v4  ;;  %112 = vmatprep.subr.mxu0 %v88_v3  ;;  %v84_v8 = vld [vmem:[#allocation5 + $0x138] sm:$0xff]  ;;  %v82_v10 = vld [vmem:[#allocation5 + $0x128] sm:$0xff]  ;;  %v81_v11 = vld [vmem:[#allocation5 + $0x120] sm:$0xff] }
  0x21   :  { %305 = vmatpush3.msra.mxu1 %v92_v4  ;;  %113 = vmatpush1.msra.mxu0 %v87_v5  ;;  %v83_v12 = vld [vmem:[#allocation5 + $0x130] sm:$0xff]  ;;  %v78_v14 = vld [vmem:[#allocation5 + $0x108] sm:$0xff]  ;;  %v80_v15 = vld [vmem:[#allocation5 + $0x118] sm:$0xff]  ;;  %v97_v53 = vsub.s32 0, %v96_v52  ;;  %v101_v55 = vsub.s32 1, %v96_v52  ;;  %v105_v56 = vsub.s32 2, %v96_v52 }
  0x22   :  { %306 = vmatprep.subr.mxu1 %v89_v7  ;;  %114 = vmatprep.subr.mxu0 %v85_v6  ;;  %v79_v13 = vld [vmem:[#allocation5 + $0x110] sm:$0xff]  ;;  %v76_v16 = vld [vmem:[#allocation5 + $0xf8] sm:$0xff]  ;;  %v77_v18 = vld [vmem:[#allocation5 + $0x100] sm:$0xff] }
  0x23   :  { %307 = vmatpush3.msra.mxu1 %v89_v7  ;;  %115 = vmatpush1.msra.mxu0 %v84_v8  ;;  %v75_v17 = vld [vmem:[#allocation5 + $0xf0] sm:$0xff]  ;;  %v73_v19 = vld [vmem:[#allocation5 + $0xe0] sm:$0xff]  ;;  %v72_v20 = vld [vmem:[#allocation5 + $0xd8] sm:$0xff] }
  0x24   :  { %308 = vmatprep.subr.mxu1 %v86_v9  ;;  %116 = vmatprep.subr.mxu0 %v82_v10  ;;  %v74_v21 = vld [vmem:[#allocation5 + $0xe8] sm:$0xff]  ;;  %v69_v23 = vld [vmem:[#allocation5 + $0xc0] sm:$0xff]  ;;  %v71_v24 = vld [vmem:[#allocation5 + $0xd0] sm:$0xff] }
  0x25   :  { %309 = vmatpush3.msra.mxu1 %v86_v9  ;;  %117 = vmatpush1.msra.mxu0 %v81_v11  ;;  %v70_v22 = vld [vmem:[#allocation5 + $0xc8] sm:$0xff]  ;;  %v67_v25 = vld [vmem:[#allocation5 + $0xb0] sm:$0xff]  ;;  %v68_v27 = vld [vmem:[#allocation5 + $0xb8] sm:$0xff] }
  0x26   :  { %310 = vmatprep.subr.mxu1 %v83_v12  ;;  %118 = vmatprep.subr.mxu0 %v79_v13  ;;  %v66_v26 = vld [vmem:[#allocation5 + $0xa8] sm:$0xff]  ;;  %v64_v28 = vld [vmem:[#allocation5 + $0x98] sm:$0xff]  ;;  %v63_v29 = vld [vmem:[#allocation5 + $0x90] sm:$0xff] }
  0x27   :  { %311 = vmatpush3.msra.mxu1 %v83_v12  ;;  %119 = vmatpush1.msra.mxu0 %v78_v14  ;;  %v65_v30 = vld [vmem:[#allocation5 + $0xa0] sm:$0xff]  ;;  %v60_v32 = vld [vmem:[#allocation5 + $0x78] sm:$0xff]  ;;  %v62_v33 = vld [vmem:[#allocation5 + $0x88] sm:$0xff] }
  0x28   :  { %312 = vmatprep.subr.mxu1 %v80_v15  ;;  %120 = vmatprep.subr.mxu0 %v76_v16  ;;  %v61_v31 = vld [vmem:[#allocation5 + $0x80] sm:$0xff]  ;;  %v58_v34 = vld [vmem:[#allocation5 + $0x68] sm:$0xff]  ;;  %v59_v36 = vld [vmem:[#allocation5 + $0x70] sm:$0xff] }
  0x29   :  { %313 = vmatpush3.msra.mxu1 %v80_v15  ;;  %121 = vmatpush1.msra.mxu0 %v75_v17  ;;  %v57_v35 = vld [vmem:[#allocation5 + $0x60] sm:$0xff]  ;;  %v55_v37 = vld [vmem:[#allocation5 + $0x50] sm:$0xff]  ;;  %v54_v38 = vld [vmem:[#allocation5 + $0x48] sm:$0xff] }
  0x2a   :  { %314 = vmatprep.subr.mxu1 %v77_v18  ;;  %122 = vmatprep.subr.mxu0 %v73_v19  ;;  %v56_v39 = vld [vmem:[#allocation5 + $0x58] sm:$0xff]  ;;  %v51_v41 = vld [vmem:[#allocation5 + $0x30] sm:$0xff]  ;;  %v53_v42 = vld [vmem:[#allocation5 + $0x40] sm:$0xff] }
  0x2b   :  { %315 = vmatpush3.msra.mxu1 %v77_v18  ;;  %123 = vmatpush1.msra.mxu0 %v72_v20  ;;  %v52_v40 = vld [vmem:[#allocation5 + $0x38] sm:$0xff]  ;;  %v49_v43 = vld [vmem:[#allocation5 + $0x20] sm:$0xff]  ;;  %v50_v45 = vld [vmem:[#allocation5 + $0x28] sm:$0xff] }
  0x2c   :  { %316 = vmatprep.subr.mxu1 %v74_v21  ;;  %124 = vmatprep.subr.mxu0 %v70_v22  ;;  %v48_v44 = vld [vmem:[#allocation5 + $0x18] sm:$0xff]  ;;  %v46_v46 = vld [vmem:[#allocation5 + $0x8] sm:$0xff]  ;;  %v45_v47 = vld [vmem:[#allocation5] sm:$0xff] }
  0x2d   :  { %317 = vmatpush3.msra.mxu1 %v74_v21  ;;  %125 = vmatpush1.msra.mxu0 %v69_v23  ;;  %v47_v48 = vld [vmem:[#allocation5 + $0x10] sm:$0xff]  ;;  %v44_v50 = vld [vmem:[#allocation2 + $0x8] sm:$0xff] }
  0x2e   :  { %318 = vmatprep.subr.mxu1 %v71_v24  ;;  %126 = vmatprep.subr.mxu0 %v67_v25  ;;  %v43_v49 = vld [vmem:[#allocation2] sm:$0xff] }
  0x2f   :  { %319 = vmatpush3.msra.mxu1 %v71_v24  ;;  %127 = vmatpush1.msra.mxu0 %v66_v26  ;;  %v93_v54 = vld [vmem:[%s463_s2] sm:$0x7]  ;;  %s387_s2 = scalar_lea.vmem %s274_s27, 768 }
  0x30   :  { %320 = vmatprep.subr.mxu1 %v68_v27  ;;  %128 = vmatprep.subr.mxu0 %v64_v28  ;;  %v98_v57 = vrot.slane %v93_v54, %v97_v53  ;;  %v102_v58 = vrot.slane %v93_v54, %v101_v55  ;;  %v106_v59 = vrot.slane %v93_v54, %v105_v56  ;;  %p388_p10 = scmp.ne.s32.totalorder %s274_s27, %s387_s2  ;;  %p393_p12 = scmp.lt.s32.totalorder %s387_s2, %s387_s2 }
  0x31   :  { %321 = vmatpush3.msra.mxu1 %v68_v27  ;;  %129 = vmatpush1.msra.mxu0 %v63_v29 }
  0x32   :  { %322 = vmatprep.subr.mxu1 %v65_v30  ;;  %130 = vmatprep.subr.mxu0 %v61_v31  ;;  %p394_p13 = por %p393_p12, %p392_p11 }
  0x33   :  { %323 = vmatpush3.msra.mxu1 %v65_v30  ;;  %131 = vmatpush1.msra.mxu0 %v60_v32 }
  0x34   :  { %324 = vmatprep.subr.mxu1 %v62_v33  ;;  %132 = vmatprep.subr.mxu0 %v58_v34  ;;  %p395_p0 = pnand %p394_p13, %p388_p10 }
  0x35   :  { %325 = vmatpush3.msra.mxu1 %v62_v33  ;;  %133 = vmatpush1.msra.mxu0 %v57_v35 }
  0x36   :  { %326 = vmatprep.subr.mxu1 %v59_v36  ;;  %134 = vmatprep.subr.mxu0 %v55_v37 }
  0x37   :  { %327 = vmatpush3.msra.mxu1 %v59_v36  ;;  %135 = vmatpush1.msra.mxu0 %v54_v38 }
  0x38   :  { %328 = vmatprep.subr.mxu1 %v56_v39  ;;  %136 = vmatprep.subr.mxu0 %v52_v40 }
  0x39   :  { %329 = vmatpush3.msra.mxu1 %v56_v39  ;;  %137 = vmatpush1.msra.mxu0 %v51_v41 }
  0x3a   :  { %330 = vmatprep.subr.mxu1 %v53_v42  ;;  %138 = vmatprep.subr.mxu0 %v49_v43 }
  0x3b   :  { %331 = vmatpush3.msra.mxu1 %v53_v42  ;;  %139 = vmatpush1.msra.mxu0 %v48_v44 }
  0x3c   :  { %332 = vmatprep.subr.mxu1 %v50_v45  ;;  %140 = vmatprep.subr.mxu0 %v46_v46 }
  0x3d   :  { %333 = vmatpush3.msra.mxu1 %v50_v45  ;;  %141 = vmatpush1.msra.mxu0 %v45_v47 }
  0x3e   :  { %334 = vmatprep.subr.mxu1 %v47_v48  ;;  %175 = vmatmul.mubr.f32.vlgmr.msra.gmra.mxu0 %v43_v49 }
  0x3f   :  { %335 = vmatpush3.msra.mxu1 %v47_v48  ;;  %336 = vmatprep.mubr.f32.mxu1 %v43_v49 }
  0x40   :  { %180 = vmatprep.mubr.f32.mxu0 %v419_v0  ;;  %337 = vmatmul.mubr.f32.vlgmr.msra.gmra.mxu1 %v44_v50 }
  0x42   :  { %181 = vmatmul.mubr.f32.gmra.mxu0 %v44_v50 }
  0xfe   :  { %v176_v60 = vpop.f32.mrf.mxu0 }
  0xff   :  { %v177_v61 = vadd.f32 %v176_v60, %v98_v57 }
 0x100   :  { %v178_v62 = vpop.f32.mrf.mxu0  ;;  %v338_v63 = vpop.f32.mrf.mxu1 }
 0x101   :  { %262 = vst [vmem:[#allocation7] sm:$0xff] %v177_v61  ;;  %v179_v0 = vadd.f32 %v178_v62, %v102_v58  ;;  %v259_v1 = vadd.f32 %v338_v63, %v106_v59 }
 0x102   :  { %v182_v2 = vpop.f32.mrf.mxu0  ;;  %v253_v3 = vpop.f32.mrf.mxu1 }
 0x103   :  { %263 = vst [vmem:[#allocation7 + $0x8] sm:$0xff] %v179_v0  ;;  %267 = vst [vmem:[#allocation7 + $0x28] sm:$0xff] %v259_v1  ;;  %v183_v4 = vadd.f32 %v182_v2, %v98_v57  ;;  %v254_v5 = vadd.f32 %v253_v3, %v106_v59 }
 0x104   :  { %v184_v6 = vpop.f32.mrf.mxu0 }
 0x105   :  { %265 = vst [vmem:[#allocation7 + $0x18] sm:$0xff] %v183_v4  ;;  %264 = vst [vmem:[#allocation7 + $0x10] sm:$0xff] %v254_v5  ;;  %v185_v7 = vadd.f32 %v184_v6, %v102_v58 }
 0x107   :  { %266 = vst [vmem:[#allocation7 + $0x20] sm:$0xff] %v185_v7 }
 0x108   :  { %398 = shalt.err (!%p395_p0)
}
 0x109   :  { %279 = dma.vmem_to_hbm [thread:$0]  %s274_s27, 768, %s464_s3, [#allocation4], %s417_s22, %s417_s22, %s418_s23  }
 0x10a   :  { %411 = dma.done.wait [#allocation4], 768  }
 0x10b   :  { %412 = vsyncadd [#allocation4], 4294966528 }
 0x10c   :  { %283 = vsyncpa [#allocation3], 1 }
 0x10d   :  { %284 = vsyncpa [#allocation6], 1 }
 0x10e   :  { %285 = vsyncpa [#allocation4], 1 }

</bundles_post_ra>
